<compile_context>
chip_gen: v7x
topology: tpu7x:2x2x1
jax: 0.10.0
libtpu: 0.0.40
codegen_flags: <defaults>
</compile_context>

<pallas_src>
import jax
import jax.numpy as jnp
from jax.experimental import pallas as pl
from jax.experimental.pallas import tpu as pltpu


# ----------------------------- configuration ------------------------------
BATCH = 2
IN_CH = 4
SPATIAL = 16                      # H = W = 16
EFFNET_OUT_FEATURES = 32          # stand-in for 1792
HIDDEN = 64                       # stand-in for 512
OUT_CLASSES = 8                   # stand-in for len(label_converter)
OUT_PAD = 128                     # lane-dense output width (sliced to 8)
BN_EPS = 1e-5
LEAKY_SLOPE = 0.01                # F.leaky_relu default


def _leaky_relu(x):
    return jnp.where(x > 0, x, LEAKY_SLOPE * x)


# ------------------------------ Pallas kernel ------------------------------
def _tagger_kernel(x_ref, wb_ref, w1_ref, w2_ref, bias_ref, out_ref):
    # --- stand-in backbone: pool + 1x1 conv fused into one weight ---
    # x_ref: (B, C*H*W) f32, wb_ref: (C*H*W, F) bf16  (already divided by HW).
    feat = jnp.dot(x_ref[...].astype(jnp.bfloat16), wb_ref[...],
                   preferred_element_type=jnp.float32)              # (B, F)

    # t = leaky_relu(effnet(t_in))[:, :, 0, 0]
    t = _leaky_relu(feat)

    # out_1: BatchNorm1d (folded) -> Dropout (identity) -> Linear; leaky_relu
    h = jnp.dot(t.astype(jnp.bfloat16), w1_ref[...],
                preferred_element_type=jnp.float32) + bias_ref[0:1, :HIDDEN]
    t1 = _leaky_relu(h)

    # out_2: BatchNorm1d (folded) -> Dropout (identity) -> Linear (lane-padded)
    z = jnp.dot(t1.astype(jnp.bfloat16), w2_ref[...],
                preferred_element_type=jnp.float32) + bias_ref[1:2, :]

    # clamp(-10, 10) then sigmoid; lane-dense (B, 128) store.
    z = jnp.clip(z, -10.0, 10.0)
    out_ref[...] = jax.nn.sigmoid(z)


# ------------------------------ host wrapper -------------------------------
@jax.jit
def effnet_tagger_forward(x_nchw, folded):
    """x_nchw: (B, C, H, W) float32.  Returns (B, OUT_CLASSES) float32."""
    b, c, h, w = x_nchw.shape
    hw = h * w
    # Free row-major reshape (no transpose, no HBM round trip).
    x2 = x_nchw.reshape(b, c * hw)

    vmem = pl.BlockSpec(memory_space=pltpu.MemorySpace.VMEM)
    out = pl.pallas_call(
        _tagger_kernel,
        out_shape=jax.ShapeDtypeStruct((b, OUT_PAD), jnp.float32),
        in_specs=[vmem] * 5,
        out_specs=vmem,
    )(x2, folded["wb"], folded["w1"], folded["w2"], folded["bias"])
    return out[:, :OUT_CLASSES]


# --------------------- one-time inference-param folding --------------------
def fold_inference_params(params, hw):
    """Fold pool-into-conv and eval-mode BN-into-Linear (exact, done in f32)."""
    f, hdim, o = EFFNET_OUT_FEATURES, HIDDEN, OUT_CLASSES

    # Pool before the 1x1 conv (both linear, they commute), then absorb the
    # 1/HW and the block-diagonal pooling matrix into a single (C*HW, F) weight.
    wb = jnp.repeat(params["wc"] / hw, hw, axis=0)                  # (C*HW, F)

    # BatchNorm1d (eval) folded into the following Linear.
    s1 = params["g1"] * jax.lax.rsqrt(params["v1"] + BN_EPS)        # (1, F)
    w1f = params["w1"] * s1.reshape(f, 1)                           # (F, H)
    b1f = (params["be1"] - params["m1"] * s1) @ params["w1"] + params["bl1"]

    s2 = params["g2"] * jax.lax.rsqrt(params["v2"] + BN_EPS)        # (1, H)
    w2f = params["w2"] * s2.reshape(hdim, 1)                        # (H, O)
    b2f = (params["be2"] - params["m2"] * s2) @ params["w2"] + params["bl2"]

    # Lane-pad the final layer to 128 output columns (zero weights/bias in the
    # padded lanes; they are sliced off in the wrapper).
    w2p = jnp.zeros((hdim, OUT_PAD), jnp.float32).at[:, :o].set(w2f)

    # Pack both biases into a single (2, 128) operand: row 0 = b1, row 1 = b2.
    bias = jnp.zeros((2, OUT_PAD), jnp.float32)
    bias = bias.at[0, :hdim].set(b1f[0])
    bias = bias.at[1, :o].set(b2f[0])

    return {
        "wb": wb.astype(jnp.bfloat16),      # weights in bf16, f32 accumulation
        "w1": w1f.astype(jnp.bfloat16),
        "w2": w2p.astype(jnp.bfloat16),
        "bias": bias,                       # biases stay f32
    }


def make_params(key):
    ks = jax.random.split(key, 12)
    f, hdim, o = EFFNET_OUT_FEATURES, HIDDEN, OUT_CLASSES

    def u(k, shape, lo=-0.1, hi=0.1):
        return jax.random.uniform(k, shape, jnp.float32, lo, hi)

    return {
        # stand-in backbone 1x1 conv weight: (C, F)
        "wc": u(ks[0], (IN_CH, f)),
        # out_1: BatchNorm1d(F) + Linear(F -> HIDDEN) (weights pre-transposed)
        "g1": u(ks[1], (1, f), 0.8, 1.2),
        "be1": u(ks[2], (1, f)),
        "m1": u(ks[3], (1, f)),
        "v1": u(ks[4], (1, f), 0.5, 1.5),
        "w1": u(ks[5], (f, hdim)),
        "bl1": u(ks[6], (1, hdim)),
        # out_2: BatchNorm1d(HIDDEN) + Linear(HIDDEN -> OUT_CLASSES)
        "g2": u(ks[7], (1, hdim), 0.8, 1.2),
        "be2": u(ks[8], (1, hdim)),
        "m2": u(ks[9], (1, hdim)),
        "v2": u(ks[10], (1, hdim), 0.5, 1.5),
        "w2": u(ks[11], (hdim, o)),
        "bl2": jnp.zeros((1, o), jnp.float32),
    }


if __name__ == "__main__":
    key = jax.random.PRNGKey(0)
    k_x, k_p = jax.random.split(key)
    x = jax.random.normal(k_x, (BATCH, IN_CH, SPATIAL, SPATIAL), jnp.float32)

    raw_params = make_params(k_p)
    folded = fold_inference_params(raw_params, SPATIAL * SPATIAL)

    out = effnet_tagger_forward(x, folded)
    out = jax.block_until_ready(out)

    assert out.shape == (BATCH, OUT_CLASSES)
    assert bool(jnp.all(jnp.isfinite(out)))
    assert bool(jnp.all((out >= 0.0) & (out <= 1.0)))   # sigmoid range
    print("KERNEL_OK")
</pallas_src>

<mosaic_0001>
module attributes {stable_mosaic.version = 11 : i64} {
  func.func @_tagger_kernel(%arg0: memref<2x1024xf32, #tpu.memory_space<vmem>>, %arg1: memref<1024x32xbf16, #tpu.memory_space<vmem>>, %arg2: memref<32x64xbf16, #tpu.memory_space<vmem>>, %arg3: memref<64x128xbf16, #tpu.memory_space<vmem>>, %arg4: memref<2x128xf32, #tpu.memory_space<vmem>>, %arg5: memref<2x128xf32, #tpu.memory_space<vmem>>) attributes {dimension_semantics = [], scalar_prefetch = 0 : i64, scratch_operands = 0 : i64, tpu.core_type = #tpu.core_type<tc>} {
    %c0 = arith.constant 0 : index
    %c0_0 = arith.constant 0 : index
    %0 = vector.load %arg0[%c0, %c0_0] : memref<2x1024xf32, #tpu.memory_space<vmem>>, vector<2x1024xf32>
    %1 = arith.truncf %0 : vector<2x1024xf32> to vector<2x1024xbf16>
    %c0_1 = arith.constant 0 : index
    %c0_2 = arith.constant 0 : index
    %2 = vector.load %arg1[%c0_1, %c0_2] : memref<1024x32xbf16, #tpu.memory_space<vmem>>, vector<1024x32xbf16>
    %cst = arith.constant dense<0.000000e+00> : vector<2x32xf32>
    %3 = tpu.matmul %1, %2, %cst {dimension_numbers = #tpu.dot_dimension_numbers<[1], [0], [0], [1], [0, 0, 1, 1], [], []>} : vector<2x1024xbf16>, vector<1024x32xbf16>, vector<2x32xf32> -> vector<2x32xf32>
    %cst_3 = arith.constant 0.000000e+00 : f32
    %4 = vector.broadcast %cst_3 : f32 to vector<2x32xf32>
    %5 = arith.cmpf ogt, %3, %4 : vector<2x32xf32>
    %cst_4 = arith.constant 0.00999999977 : f32
    %6 = vector.broadcast %cst_4 : f32 to vector<2x32xf32>
    %7 = arith.mulf %6, %3 : vector<2x32xf32>
    %8 = arith.select %5, %3, %7 : vector<2x32xi1>, vector<2x32xf32>
    %9 = arith.truncf %8 : vector<2x32xf32> to vector<2x32xbf16>
    %c0_5 = arith.constant 0 : index
    %c0_6 = arith.constant 0 : index
    %10 = vector.load %arg2[%c0_5, %c0_6] : memref<32x64xbf16, #tpu.memory_space<vmem>>, vector<32x64xbf16>
    %cst_7 = arith.constant dense<0.000000e+00> : vector<2x64xf32>
    %11 = tpu.matmul %9, %10, %cst_7 {dimension_numbers = #tpu.dot_dimension_numbers<[1], [0], [0], [1], [0, 0, 1, 1], [], []>} : vector<2x32xbf16>, vector<32x64xbf16>, vector<2x64xf32> -> vector<2x64xf32>
    %c0_8 = arith.constant 0 : index
    %c0_9 = arith.constant 0 : index
    %12 = vector.load %arg4[%c0_8, %c0_9] : memref<2x128xf32, #tpu.memory_space<vmem>>, vector<1x64xf32>
    %13 = vector.broadcast %12 : vector<1x64xf32> to vector<2x64xf32>
    %14 = arith.addf %11, %13 : vector<2x64xf32>
    %cst_10 = arith.constant 0.000000e+00 : f32
    %15 = vector.broadcast %cst_10 : f32 to vector<2x64xf32>
    %16 = arith.cmpf ogt, %14, %15 : vector<2x64xf32>
    %cst_11 = arith.constant 0.00999999977 : f32
    %17 = vector.broadcast %cst_11 : f32 to vector<2x64xf32>
    %18 = arith.mulf %17, %14 : vector<2x64xf32>
    %19 = arith.select %16, %14, %18 : vector<2x64xi1>, vector<2x64xf32>
    %20 = arith.truncf %19 : vector<2x64xf32> to vector<2x64xbf16>
    %c0_12 = arith.constant 0 : index
    %c0_13 = arith.constant 0 : index
    %21 = vector.load %arg3[%c0_12, %c0_13] : memref<64x128xbf16, #tpu.memory_space<vmem>>, vector<64x128xbf16>
    %cst_14 = arith.constant dense<0.000000e+00> : vector<2x128xf32>
    %22 = tpu.matmul %20, %21, %cst_14 {dimension_numbers = #tpu.dot_dimension_numbers<[1], [0], [0], [1], [0, 0, 1, 1], [], []>} : vector<2x64xbf16>, vector<64x128xbf16>, vector<2x128xf32> -> vector<2x128xf32>
    %c1 = arith.constant 1 : index
    %c0_15 = arith.constant 0 : index
    %23 = vector.load %arg4[%c1, %c0_15] : memref<2x128xf32, #tpu.memory_space<vmem>>, vector<1x128xf32>
    %24 = vector.broadcast %23 : vector<1x128xf32> to vector<2x128xf32>
    %25 = arith.addf %22, %24 : vector<2x128xf32>
    %cst_16 = arith.constant -1.000000e+01 : f32
    %cst_17 = arith.constant 1.000000e+01 : f32
    %26 = vector.broadcast %cst_16 : f32 to vector<2x128xf32>
    %27 = arith.maximumf %26, %25 : vector<2x128xf32>
    %28 = vector.broadcast %cst_17 : f32 to vector<2x128xf32>
    %29 = arith.minimumf %28, %27 : vector<2x128xf32>
    %30 = arith.negf %29 : vector<2x128xf32>
    %31 = math.exp %30 : vector<2x128xf32>
    %cst_18 = arith.constant 1.000000e+00 : f32
    %32 = vector.broadcast %cst_18 : f32 to vector<2x128xf32>
    %33 = arith.addf %32, %31 : vector<2x128xf32>
    %34 = arith.divf %32, %33 : vector<2x128xf32>
    %c0_19 = arith.constant 0 : index
    %c0_20 = arith.constant 0 : index
    %35 = vector.load %arg5[%c0_19, %c0_20] : memref<2x128xf32, #tpu.memory_space<vmem>>, vector<2x128xf32>
    tpu.vector_store %arg5[%c0_19, %c0_20], %34 {strides = array<i32>} : memref<2x128xf32, #tpu.memory_space<vmem>>, vector<2x128xf32>,
    return
  }
}

</mosaic_0001>

<bundles_post_ra>
// kernel: effnet_tagger_forward.1
= control target key start
LH: loop header
LB: loop body
LE: loop exit
PB: predicated region body
PF: predicated region fallthrough
CT: control target
= control target key end

     0   :  { %v30_v28 = vlaneseq  ;;  %v1221_v36 = vmov 1983009808   ;;  %s1495_s0 = inlined_call_operand.vmem [shape: f32[2,1024], index: 0, kind: input, shape index: {}]   ;;  %s1496_s1 = inlined_call_operand.vmem [shape: bf16[1024,32], index: 1, kind: input, shape index: {}]   ;;  %s1497_s2 = inlined_call_operand.vmem [shape: bf16[32,64], index: 2, kind: input, shape index: {}]   ;;  %s1498_s3 = inlined_call_operand.vmem [shape: bf16[64,128], index: 3, kind: input, shape index: {}]   ;;  %s1499_s4 = inlined_call_operand.vmem [shape: f32[2,128], index: 4, kind: input, shape index: {}]   ;;  %s1500_s5 = inlined_call_operand.hbm [shape: f32[2,128], index: 5, kind: output, shape index: {}]  }
   0x1   :  { %v1121_v0 = vld [vmem:[%s1496_s1 + $0x40] sm:$0xff]   ;;  %v1125_v4 = vld [vmem:[%s1496_s1 + $0x48] sm:$0xff]   ;;  %v1129_v8 = vld [vmem:[%s1496_s1 + $0x50] sm:$0xff]   ;;  %v28_v37 = vunpack.c.l.s4 %v1221_v36 }
   0x2   :  { %v1122_v1 = vld [vmem:[%s1496_s1 + $0xc0] sm:$0xff]   ;;  %1001 = vmatprep.subr.bf16.mxu0 %v1121_v0  ;;  %v1126_v5 = vld [vmem:[%s1496_s1 + $0xc8] sm:$0xff]   ;;  %v1130_v9 = vld [vmem:[%s1496_s1 + $0xd0] sm:$0xff]   ;;  %v31_v33 = vshrl.u32 %v30_v28, 7 }
   0x3   :  { %v1123_v2 = vld [vmem:[%s1496_s1] sm:$0xff]   ;;  %1023 = vmatprep.subr.bf16.mxu1 %v1122_v1  ;;  %v1127_v6 = vld [vmem:[%s1496_s1 + $0x8] sm:$0xff]   ;;  %v1131_v10 = vld [vmem:[%s1496_s1 + $0x10] sm:$0xff]   ;;  %v29_v39 = vunpack.c.0.s8 %v28_v37 }
   0x4   :  { %v1124_v3 = vld [vmem:[%s1496_s1 + $0x80] sm:$0xff]   ;;  %1002 = vmatpush3.bf16.msra.mxu0 %v1123_v2  ;;  %v1128_v7 = vld [vmem:[%s1496_s1 + $0x88] sm:$0xff]   ;;  %v1132_v11 = vld [vmem:[%s1496_s1 + $0x90] sm:$0xff]  }
   0x5   :  { %1024 = vmatpush3.bf16.msra.mxu1 %v1124_v3  ;;  %1003 = vmatprep.subr.bf16.mxu0 %v1125_v4  ;;  %v1133_v12 = vld [vmem:[%s1496_s1 + $0x58] sm:$0xff]   ;;  %v1137_v16 = vld [vmem:[%s1496_s1 + $0x60] sm:$0xff]   ;;  %v1141_v20 = vld [vmem:[%s1496_s1 + $0x68] sm:$0xff]   ;;  %v1360_v41 = vsub.s32 %v29_v39, %v31_v33 }
   0x6   :  { %1025 = vmatprep.subr.bf16.mxu1 %v1126_v5  ;;  %v1134_v13 = vld [vmem:[%s1496_s1 + $0xd8] sm:$0xff]   ;;  %v1138_v17 = vld [vmem:[%s1496_s1 + $0xe0] sm:$0xff]   ;;  %v1142_v21 = vld [vmem:[%s1496_s1 + $0xe8] sm:$0xff]  }
   0x7   :  { %v1135_v14 = vld [vmem:[%s1496_s1 + $0x18] sm:$0xff]   ;;  %v1139_v18 = vld [vmem:[%s1496_s1 + $0x20] sm:$0xff]   ;;  %v1143_v22 = vld [vmem:[%s1496_s1 + $0x28] sm:$0xff]  }
   0x8   :  { %1004 = vmatpush3.bf16.msra.mxu0 %v1127_v6  ;;  %v1136_v15 = vld [vmem:[%s1496_s1 + $0x98] sm:$0xff]   ;;  %v1140_v19 = vld [vmem:[%s1496_s1 + $0xa0] sm:$0xff]   ;;  %v1144_v23 = vld [vmem:[%s1496_s1 + $0xa8] sm:$0xff]  }
   0x9   :  { %1026 = vmatpush3.bf16.msra.mxu1 %v1128_v7  ;;  %1005 = vmatprep.subr.bf16.mxu0 %v1129_v8  ;;  %v1145_v24 = vld [vmem:[%s1496_s1 + $0x70] sm:$0xff]   ;;  %v1149_v29 = vld [vmem:[%s1496_s1 + $0x78] sm:$0xff]   ;;  %v22_v34 = vld [vmem:[%s1495_s0] sm:$0xff] }
   0xa   :  { %1027 = vmatprep.subr.bf16.mxu1 %v1130_v9  ;;  %v1146_v25 = vld [vmem:[%s1496_s1 + $0xf0] sm:$0xff]   ;;  %v1150_v30 = vld [vmem:[%s1496_s1 + $0xf8] sm:$0xff]   ;;  %v1154_v35 = vld [vmem:[%s1496_s1 + $0x140] sm:$0xff]   ;;  %v26_v40 = vcombine.high %v22_v34, %v22_v34  ;;  %v33_v42 = vrot.slane %v22_v34, %v1360_v41 }
   0xb   :  { %v1147_v26 = vld [vmem:[%s1496_s1 + $0x30] sm:$0xff]   ;;  %v1151_v31 = vld [vmem:[%s1496_s1 + $0x38] sm:$0xff]   ;;  %v1155_v38 = vld [vmem:[%s1496_s1 + $0x1c0] sm:$0xff]  }
   0xc   :  { %1006 = vmatpush3.bf16.msra.mxu0 %v1131_v10  ;;  %v1148_v27 = vld [vmem:[%s1496_s1 + $0xb0] sm:$0xff]   ;;  %v1152_v32 = vld [vmem:[%s1496_s1 + $0xb8] sm:$0xff]   ;;  %v40_v43 = vrot.slane %v26_v40, %v1360_v41  ;;  %v41_v44 = vcombine.high %v33_v42, %v33_v42  ;;  %v1156_v46 = vld [vmem:[%s1496_s1 + $0x100] sm:$0xff]   ;;  %v68_v47 = vpack.c.bf16 %v33_v42, %v33_v42 }
   0xd   :  { %1028 = vmatpush3.bf16.msra.mxu1 %v1132_v11  ;;  %1007 = vmatprep.subr.bf16.mxu0 %v1133_v12  ;;  %v1157_v49 = vld [vmem:[%s1496_s1 + $0x180] sm:$0xff]   ;;  %v1158_v52 = vld [vmem:[%s1496_s1 + $0x148] sm:$0xff]   ;;  %v1162_v56 = vld [vmem:[%s1496_s1 + $0x150] sm:$0xff]  }
   0xe   :  { %1029 = vmatprep.subr.bf16.mxu1 %v1134_v13  ;;  %v42_v45 = vcombine.high %v40_v43, %v40_v43  ;;  %v70_v48 = vpack.c.bf16 %v40_v43, %v40_v43  ;;  %v69_v50 = vpack.c.bf16 %v41_v44, %v41_v44  ;;  %v1159_v53 = vld [vmem:[%s1496_s1 + $0x1c8] sm:$0xff]   ;;  %v1163_v57 = vld [vmem:[%s1496_s1 + $0x1d0] sm:$0xff]   ;;  %v1166_v60 = vld [vmem:[%s1496_s1 + $0x158] sm:$0xff]  }
   0xf   :  { %v1160_v54 = vld [vmem:[%s1496_s1 + $0x108] sm:$0xff]   ;;  %v1164_v58 = vld [vmem:[%s1496_s1 + $0x110] sm:$0xff]   ;;  %v1167_v61 = vld [vmem:[%s1496_s1 + $0x1d8] sm:$0xff]  }
  0x10   :  { %1008 = vmatpush3.bf16.msra.mxu0 %v1135_v14  ;;  %v71_v51 = vpack.c.bf16 %v42_v45, %v42_v45  ;;  %620 = vmatprep.mubr.bf16.mxu0 %v69_v50  ;;  %v1161_v55 = vld [vmem:[%s1496_s1 + $0x188] sm:$0xff]   ;;  %v1165_v59 = vld [vmem:[%s1496_s1 + $0x190] sm:$0xff]   ;;  %v1168_v62 = vld [vmem:[%s1496_s1 + $0x118] sm:$0xff]  }
  0x11   :  { %1030 = vmatpush3.bf16.msra.mxu1 %v1136_v15  ;;  %1009 = vmatprep.subr.bf16.mxu0 %v1137_v16  ;;  %v1169_v63 = vld [vmem:[%s1496_s1 + $0x198] sm:$0xff]   ;;  %v1170_v0 = vld [vmem:[%s1496_s1 + $0x160] sm:$0xff]   ;;  %v1174_v4 = vld [vmem:[%s1496_s1 + $0x168] sm:$0xff]  }
  0x12   :  { %1031 = vmatprep.subr.bf16.mxu1 %v1138_v17  ;;  %660 = vmatprep.mubr.bf16.mxu1 %v71_v51  ;;  %v1171_v1 = vld [vmem:[%s1496_s1 + $0x1e0] sm:$0xff]   ;;  %v1175_v5 = vld [vmem:[%s1496_s1 + $0x1e8] sm:$0xff]   ;;  %v1178_v8 = vld [vmem:[%s1496_s1 + $0x170] sm:$0xff]  }
  0x13   :  { %v1172_v2 = vld [vmem:[%s1496_s1 + $0x120] sm:$0xff]   ;;  %v1176_v6 = vld [vmem:[%s1496_s1 + $0x128] sm:$0xff]   ;;  %v1179_v9 = vld [vmem:[%s1496_s1 + $0x1f0] sm:$0xff]  }
  0x14   :  { %1010 = vmatpush3.bf16.msra.mxu0 %v1139_v18  ;;  %v1173_v3 = vld [vmem:[%s1496_s1 + $0x1a0] sm:$0xff]   ;;  %v1177_v7 = vld [vmem:[%s1496_s1 + $0x1a8] sm:$0xff]   ;;  %v1180_v11 = vld [vmem:[%s1496_s1 + $0x130] sm:$0xff]  }
  0x15   :  { %1032 = vmatpush3.bf16.msra.mxu1 %v1140_v19  ;;  %1011 = vmatprep.subr.bf16.mxu0 %v1141_v20  ;;  %v23_v10 = vld [vmem:[%s1495_s0 + $0x8] sm:$0xff]  ;;  %v1181_v12 = vld [vmem:[%s1496_s1 + $0x1b0] sm:$0xff]   ;;  %v1182_v15 = vld [vmem:[%s1496_s1 + $0x178] sm:$0xff]  }
  0x16   :  { %1033 = vmatprep.subr.bf16.mxu1 %v1142_v21  ;;  %v50_v13 = vrot.slane %v23_v10, %v1360_v41  ;;  %v43_v14 = vcombine.high %v23_v10, %v23_v10  ;;  %v1183_v16 = vld [vmem:[%s1496_s1 + $0x1f8] sm:$0xff]  }
  0x18   :  { %1012 = vmatpush3.bf16.msra.mxu0 %v1143_v22  ;;  %v58_v17 = vcombine.high %v50_v13, %v50_v13  ;;  %v57_v18 = vrot.slane %v43_v14, %v1360_v41 }
  0x19   :  { %1034 = vmatpush3.bf16.msra.mxu1 %v1144_v23  ;;  %1013 = vmatprep.subr.bf16.mxu0 %v1145_v24 }
  0x1a   :  { %1035 = vmatprep.subr.bf16.mxu1 %v1146_v25 }
  0x1c   :  { %1014 = vmatpush3.bf16.msra.mxu0 %v1147_v26 }
  0x1d   :  { %1036 = vmatpush3.bf16.msra.mxu1 %v1148_v27  ;;  %1015 = vmatprep.subr.bf16.mxu0 %v1149_v29 }
  0x1e   :  { %1037 = vmatprep.subr.bf16.mxu1 %v1150_v30 }
  0x20   :  { %1016 = vmatpush3.bf16.msra.mxu0 %v1151_v31 }
  0x21   :  { %1038 = vmatpush3.bf16.msra.mxu1 %v1152_v32  ;;  %1045 = vmatprep.subr.bf16.mxu0 %v1154_v35 }
  0x22   :  { %1067 = vmatprep.subr.bf16.mxu1 %v1155_v38 }
  0x23   :  { %621 = vmatmul.mubr.bf16.vlgmr.msra.gmra.mrb[0].mxu0 %v68_v47 }
  0x24   :  { %661 = vmatmul.mubr.bf16.vlgmr.msra.gmra.mrb[0].mxu1 %v70_v48  ;;  %1046 = vmatpush3.bf16.msra.mxu0 %v1156_v46 }
  0x25   :  { %1068 = vmatpush3.bf16.msra.mxu1 %v1157_v49  ;;  %1047 = vmatprep.subr.bf16.mxu0 %v1158_v52 }
  0x26   :  { %1069 = vmatprep.subr.bf16.mxu1 %v1159_v53 }
  0x28   :  { %1048 = vmatpush3.bf16.msra.mxu0 %v1160_v54 }
  0x29   :  { %1070 = vmatpush3.bf16.msra.mxu1 %v1161_v55  ;;  %1049 = vmatprep.subr.bf16.mxu0 %v1162_v56 }
  0x2a   :  { %1071 = vmatprep.subr.bf16.mxu1 %v1163_v57 }
  0x2c   :  { %1050 = vmatpush3.bf16.msra.mxu0 %v1164_v58 }
  0x2d   :  { %1072 = vmatpush3.bf16.msra.mxu1 %v1165_v59  ;;  %1051 = vmatprep.subr.bf16.mxu0 %v1166_v60 }
  0x2e   :  { %1073 = vmatprep.subr.bf16.mxu1 %v1167_v61 }
  0x30   :  { %1052 = vmatpush3.bf16.msra.mxu0 %v1168_v62 }
  0x31   :  { %1074 = vmatpush3.bf16.msra.mxu1 %v1169_v63  ;;  %1053 = vmatprep.subr.bf16.mxu0 %v1170_v0 }
  0x32   :  { %1075 = vmatprep.subr.bf16.mxu1 %v1171_v1 }
  0x34   :  { %1054 = vmatpush3.bf16.msra.mxu0 %v1172_v2 }
  0x35   :  { %1076 = vmatpush3.bf16.msra.mxu1 %v1173_v3  ;;  %1055 = vmatprep.subr.bf16.mxu0 %v1174_v4 }
  0x36   :  { %1077 = vmatprep.subr.bf16.mxu1 %v1175_v5 }
  0x38   :  { %1056 = vmatpush3.bf16.msra.mxu0 %v1176_v6 }
  0x39   :  { %1078 = vmatpush3.bf16.msra.mxu1 %v1177_v7  ;;  %1057 = vmatprep.subr.bf16.mxu0 %v1178_v8 }
  0x3a   :  { %1079 = vmatprep.subr.bf16.mxu1 %v1179_v9 }
  0x3b   :  { %10 = vsyncpa [#allocation3], 0  ;;  %v73_v19 = vpack.c.bf16 %v58_v17, %v58_v17  ;;  %v59_v20 = vcombine.high %v57_v18, %v57_v18  ;;  %v1184_v21 = vld [vmem:[%s1496_s1 + $0x138] sm:$0xff]   ;;  %v72_v24 = vpack.c.bf16 %v50_v13, %v50_v13  ;;  %v74_v25 = vpack.c.bf16 %v57_v18, %v57_v18  ;;  %v1187_v26 = vld [vmem:[%s1497_s2] sm:$0xff]  }
  0x3c   :  { %1058 = vmatpush3.bf16.msra.mxu0 %v1180_v11  ;;  %v1185_v22 = vld [vmem:[%s1496_s1 + $0x1b8] sm:$0xff]   ;;  %v1222_v27 = vmov 0.0   ;;  %v1188_v28 = vld [vmem:[%s1497_s2 + $0x8] sm:$0xff]   ;;  %vm1223_vm0 = vmmov 0   ;;  %v1189_v29 = vld [vmem:[%s1498_s3] sm:$0xff]   ;;  %vm773_vm2 = vcmask 261120  }
  0x3d   :  { %1080 = vmatpush3.bf16.msra.mxu1 %v1181_v12  ;;  %v75_v23 = vpack.c.bf16 %v59_v20, %v59_v20  ;;  %1059 = vmatprep.subr.bf16.mxu0 %v1182_v15  ;;  %v1190_v30 = vld [vmem:[%s1498_s3 + $0x8] sm:$0xff]   ;;  %v1191_v57 = vld [vmem:[%s1498_s3 + $0x10] sm:$0xff]   ;;  %v1192_v58 = vld [vmem:[%s1498_s3 + $0x18] sm:$0xff]   ;;  %vm858_vm4 = vcmask 523264   ;;  %s1224_s3 = smov [#allocation2]  }
  0x3e   :  { %1081 = vmatprep.subr.bf16.mxu1 %v1183_v16  ;;  %700 = vmatprep.mubr.bf16.mxu0 %v73_v19  ;;  %v989_v59 = vld [vmem:[%s1499_s4] ss:$0 sm:$0xff]  ;;  %v993_v4 = vld [vmem:[%s1499_s4 + $0x1] ss:$0 sm:$0xff]  ;;  %s917_s13 = sshll.u32 %s1224_s3, 4  ;;  %s918_s13 = int_to_ptr.vmem [resolvable:$true] %s917_s13 }
  0x3f   :  { %740 = vmatprep.mubr.bf16.mxu1 %v75_v23  ;;  %s1197_s14 = scalar_lea.vmem %s918_s13, 32  ;;  %p1202_p1 = scmp.lt.s32.totalorder %s918_s13, %s918_s13 }
  0x40   :  { %1060 = vmatpush3.bf16.msra.mxu0 %v1184_v21  ;;  %p1198_p0 = scmp.ne.s32.totalorder %s918_s13, %s1197_s14  ;;  %p1203_p2 = scmp.lt.s32.totalorder %s1197_s14, %s1197_s14 }
  0x41   :  { %1082 = vmatpush3.bf16.msra.mxu1 %v1185_v22  ;;  %1097 = vmatprep.subr.bf16.mxu0 %v1222_v27 }
  0x42   :  { %1105 = vmatprep.subr.bf16.mxu1 %v1222_v27  ;;  %p1204_p3 = por %p1203_p2, %p1202_p1 }
  0x43   :  { %701 = vmatmul.mubr.bf16.vlgmr.msra.gmra.mrb[4].mxu0 %v72_v24 }
  0x44   :  { %741 = vmatmul.mubr.bf16.vlgmr.msra.gmra.mrb[4].mxu1 %v74_v25  ;;  %1098 = vmatpush3.bf16.msra.mxu0 %v1187_v26  ;;  %p1205_p4 = pnand %p1204_p3, %p1198_p0 }
  0x45   :  { %1099 = vmatprep.subr.bf16.mxu0 %v1222_v27  ;;  %1101 = vmatprep.mubr.msk.bf16.mxu0 %vm1223_vm0, %v1222_v27 }
  0x46   :  { %1113 = vmatprep.mubr.msk.bf16.mxu1 %vm1223_vm0, %v1222_v27  ;;  %1106 = vmatpush3.bf16.msra.mxu1 %v1189_v29 }
  0x47   :  { %1107 = vmatprep.subr.bf16.mxu1 %v1222_v27 }
  0x48   :  { %1100 = vmatpush3.bf16.msra.mxu0 %v1188_v28 }
  0x4a   :  { %1108 = vmatpush3.bf16.msra.mxu1 %v1190_v30 }
  0x4b   :  { %1109 = vmatprep.subr.bf16.mxu1 %v1222_v27 }
  0x4e   :  { %1110 = vmatpush3.bf16.msra.mxu1 %v1191_v57 }
  0x4f   :  { %1111 = vmatprep.subr.bf16.mxu1 %v1222_v27 }
  0x52   :  { %1112 = vmatpush3.bf16.msra.mxu1 %v1192_v58 }
  0xf6   :  { %v1017_v31 = vpop.f32.mrb[0].mxu0 }
  0xf7   :  { %v1039_v32 = vpop.f32.mrb[0].mxu1  ;;  %v1018_v33 = vpop.f32.mrb[1].mxu0 }
  0xf8   :  { %v1040_v34 = vpop.f32.mrb[1].mxu1  ;;  %v1019_v35 = vadd.f32 %v1018_v33, %v1017_v31  ;;  %v1020_v37 = vpop.f32.mrb[2].mxu0 }
  0xf9   :  { %v1041_v36 = vadd.f32 %v1040_v34, %v1039_v32  ;;  %v1042_v38 = vpop.f32.mrb[2].mxu1  ;;  %v1021_v39 = vpop.f32.mrb[3].mxu0 }
  0xfa   :  { %v1043_v40 = vpop.f32.mrb[3].mxu1 }
  0xfb   :  { %v663_v41 = vadd.f32 %v1041_v36, %v1019_v35 }
 0x116   :  { %v1061_v42 = vpop.f32.mrb[4].mxu0 }
 0x117   :  { %v1083_v43 = vpop.f32.mrb[4].mxu1  ;;  %v1062_v44 = vpop.f32.mrb[5].mxu0 }
 0x118   :  { %v1084_v45 = vpop.f32.mrb[5].mxu1  ;;  %v1063_v46 = vadd.f32 %v1062_v44, %v1061_v42  ;;  %v1064_v48 = vpop.f32.mrb[6].mxu0 }
 0x119   :  { %v1085_v47 = vadd.f32 %v1084_v45, %v1083_v43  ;;  %v1086_v49 = vpop.f32.mrb[6].mxu1  ;;  %v1065_v50 = vpop.f32.mrb[7].mxu0 }
 0x11a   :  { %v1087_v51 = vpop.f32.mrb[7].mxu1  ;;  %v703_v52 = vadd.f32 %v1063_v46, %v663_v41 }
 0x11c   :  { %v743_v53 = vadd.f32 %v1085_v47, %v703_v52 }
 0x11e   :  { %vm748_vm1 = vcmp.gt.f32.partialorder %v743_v53, 0.0  ;;  %v749_v54 = vmul.f32 0.01, %v743_v53 }
 0x120   :  { %v750_v55 = vsel %vm748_vm1, %v743_v53, %v749_v54 }
 0x121   :  { %v751_v56 = vpack.c.bf16 %v750_v55, %v750_v55 }
 0x123   :  { %1102 = vmatmul.mubr.msk.bf16.vlgmr.msra.gmra.mrb[8].mxu0 %vm773_vm2, %v751_v56 }
 0x1f6   :  { %v811_v60 = vpop.f32.mrb[8].mxu0 }
 0x1f7   :  { %v812_v61 = vadd.f32 %v989_v59, %v811_v60  ;;  %v1103_v62 = vpop.f32.mrb[9].mxu0 }
 0x1f8   :  { %v814_v63 = vpop.f32.mrb[10].mxu0 }
 0x1f9   :  { %vm817_vm3 = vcmp.gt.f32.partialorder %v812_v61, 0.0  ;;  %v818_v0 = vmul.f32 0.01, %v812_v61  ;;  %v1104_v1 = vpop.f32.mrb[11].mxu0 }
 0x1fb   :  { %v819_v2 = vsel %vm817_vm3, %v812_v61, %v818_v0 }
 0x1fc   :  { %v820_v3 = vpack.c.bf16 %v819_v2, %v819_v2 }
 0x1fe   :  { %1114 = vmatmul.mubr.msk.bf16.vlgmr.msra.gmra.mrb[8].mxu1 %vm858_vm4, %v820_v3 }
 0x2d1   :  { %v896_v5 = vpop.f32.mrb[8].mxu1 }
 0x2d2   :  { %v897_v6 = vadd.f32 %v993_v4, %v896_v5  ;;  %v1115_v7 = vpop.f32.mrb[9].mxu1 }
 0x2d3   :  { %v899_v8 = vpop.f32.mrb[10].mxu1 }
 0x2d4   :  { %v999_v9 = vclamps-f32 %v897_v6, 10.0  ;;  %v1116_v10 = vpop.f32.mrb[11].mxu1 }
 0x2d6   :  { %v1000_v11 = vmul.f32 -1.442695, %v999_v9 }
 0x2d8   :  { %1193 = vpow2.f32 %v1000_v11 }
 0x2e2   :  { %v1194_v12 = vpop.eup %1193 }
 0x2e3   :  { %v907_v13 = vadd.f32 1.0, %v1194_v12 }
 0x2e5   :  { %1195 = vrcp.f32 %v907_v13 }
 0x2ef   :  { %v1196_v14 = vpop.eup %1195 }
 0x2f0   :  { %910 = vst [vmem:[#allocation2] sm:$0x3] %v1196_v14 }
 0x2f1   :  { %1208 = shalt.err (!%p1205_p4)
}
 0x2f2   :  { %s1209_s16 = scalar_lea.hbm %s1500_s5, 32 }
 0x2f3   :  { %p1210_p5 = scmp.ne.s32.totalorder %s1500_s5, %s1209_s16  ;;  %p1213_p6 = scmp.lt.u32.totalorder %s1209_s16, %s1500_s5 }
 0x2f5   :  { %p1215_p7 = pnand %p1213_p6, %p1210_p5 }
 0x2f7   :  { %1218 = shalt.err (!%p1215_p7)
}
 0x2f8   :  { %920 = dma.vmem_to_hbm [thread:$0]  %s918_s13, 32, %s1500_s5, [#allocation3]  }
 0x2f9   :  { %1219 = dma.done.wait [#allocation3], 32  }
 0x2fa   :  { %1220 = vsyncadd [#allocation3], 4294967264 }
 0x2fb   :  { %924 = vsyncpa [#allocation3], 1 }

</bundles_post_ra>
